<compile_context>
chip_gen: v6e
topology: v6e:2x2x1
jax: 0.10.0
libtpu: 0.0.40
codegen_flags: <defaults>
</compile_context>

<pallas_src>
import functools

import jax
import jax.numpy as jnp
from jax.experimental import pallas as pl
from jax.experimental.pallas import tpu as pltpu


# ----------------------------------------------------------------------------
# Generic tiled matmul + bias kernel:  O = A @ B + bias
#   grid = (M/tm, N/tn, K/tk), reduction axis (k) last, f32 VMEM accumulator.
# ----------------------------------------------------------------------------
def _matmul_bias_kernel(a_ref, b_ref, bias_ref, o_ref, acc_ref):
    k = pl.program_id(2)

    @pl.when(k == 0)
    def _init():
        acc_ref[...] = jnp.zeros_like(acc_ref)

    acc_ref[...] += jnp.dot(a_ref[...], b_ref[...],
                            preferred_element_type=jnp.float32)

    @pl.when(k == pl.num_programs(2) - 1)
    def _store():
        out = acc_ref[...] + bias_ref[...].astype(jnp.float32)
        o_ref[...] = out.astype(o_ref.dtype)


def _round_up(x: int, m: int) -> int:
    return ((x + m - 1) // m) * m


def _pad2(x, rows: int, cols: int):
    r, c = x.shape
    if r == rows and c == cols:
        return x
    return jnp.pad(x, ((0, rows - r), (0, cols - c)))


def pallas_matmul_bias(a, b, bias=None, *, tm=256, tn=256, tk=256,
                       out_dtype=None):
    """out = a @ b (+ bias), tiled Pallas TPU matmul with f32 accumulation."""
    m, k = a.shape
    k2, n = b.shape
    assert k == k2, (a.shape, b.shape)
    out_dtype = out_dtype or a.dtype

    # Tile sizes: second-last dims multiples of 8, last dims multiples of 128.
    # Shrink tiles for tiny problems (less padding waste), keep output blocks
    # lane-dense (>= 128 lanes).
    tm = min(tm, _round_up(m, 8))
    tk = min(tk, _round_up(k, 128))
    tn = min(tn, _round_up(n, 128))

    mp = _round_up(m, tm)
    kp = _round_up(k, tk)
    np_ = _round_up(n, tn)

    a_p = _pad2(a, mp, kp)
    b_p = _pad2(b, kp, np_)
    if bias is None:
        bias_p = jnp.zeros((1, np_), dtype=a.dtype)
    else:
        bias_p = _pad2(jnp.asarray(bias).reshape(1, -1), 1, np_)

    grid = (mp // tm, np_ // tn, kp // tk)

    flops = 2 * mp * kp * np_
    bytes_accessed = (a_p.size * a_p.dtype.itemsize
                      + b_p.size * b_p.dtype.itemsize
                      + bias_p.size * bias_p.dtype.itemsize
                      + mp * np_ * jnp.dtype(out_dtype).itemsize)

    out_p = pl.pallas_call(
        _matmul_bias_kernel,
        out_shape=jax.ShapeDtypeStruct((mp, np_), out_dtype),
        grid_spec=pltpu.PrefetchScalarGridSpec(
            num_scalar_prefetch=0,
            grid=grid,
            in_specs=[
                pl.BlockSpec((tm, tk), lambda i, j, kk: (i, kk)),
                pl.BlockSpec((tk, tn), lambda i, j, kk: (kk, j)),
                pl.BlockSpec((1, tn), lambda i, j, kk: (0, j)),
            ],
            out_specs=pl.BlockSpec((tm, tn), lambda i, j, kk: (i, j)),
            scratch_shapes=[pltpu.VMEM((tm, tn), jnp.float32)],
        ),
        compiler_params=pltpu.CompilerParams(
            # i, j independent (megacore-shardable on v7x); k is the reduction.
            dimension_semantics=("parallel", "parallel", "arbitrary"),
            vmem_limit_bytes=48 * 1024 * 1024,  # headroom under v7x's 64 MiB
        ),
        cost_estimate=pl.CostEstimate(
            flops=flops, transcendentals=0, bytes_accessed=bytes_accessed),
    )(a_p, b_p, bias_p)

    return out_p[:m, :n]


# ----------------------------------------------------------------------------
# GraphConvolution forward:  adj @ (inputs @ weight) + bias
# ----------------------------------------------------------------------------
def graph_convolution(inputs, adj, weight, bias=None):
    # TODO(synk): torch.spmm's sparse-CSR path has no direct Pallas sparse
    # primitive; the adjacency is treated as a dense matrix here.
    support = pallas_matmul_bias(inputs, weight, bias=None)
    output = pallas_matmul_bias(adj, support, bias=bias)
    return output


# ----------------------------------------------------------------------------
# Parameter init mirroring GraphConvolution.reset_parameters():
#   stdv = 1/sqrt(out_features); weight, bias ~ U(-stdv, stdv)
# ----------------------------------------------------------------------------
def init_gcn_params(key, in_features, out_features, use_bias=True):
    stdv = 1.0 / (out_features ** 0.5)
    k_w, k_b = jax.random.split(key)
    weight = jax.random.uniform(k_w, (in_features, out_features),
                                jnp.float32, -stdv, stdv)
    bias = (jax.random.uniform(k_b, (out_features,), jnp.float32, -stdv, stdv)
            if use_bias else None)
    return weight, bias


# ----------------------------------------------------------------------------
# Pure-JAX reference for correctness checking
# ----------------------------------------------------------------------------
def graph_convolution_ref(inputs, adj, weight, bias=None):
    support = jnp.dot(inputs, weight, preferred_element_type=jnp.float32)
    output = jnp.dot(adj, support, preferred_element_type=jnp.float32)
    if bias is not None:
        output = output + bias
    return output


if __name__ == "__main__":
    # Small shapes consistent with the module: N nodes, dense adjacency.
    N = 300            # number of graph nodes (exercises padding + multi-tile)
    in_features = 96
    out_features = 48

    key = jax.random.PRNGKey(0)
    k_x, k_adj, k_p = jax.random.split(key, 3)

    x = jax.random.normal(k_x, (N, in_features), jnp.float32)

    # Random symmetric adjacency with self-loops, row-normalized (typical GCN).
    a_rand = (jax.random.uniform(k_adj, (N, N)) > 0.7).astype(jnp.float32)
    adj = jnp.clip(a_rand + a_rand.T + jnp.eye(N, dtype=jnp.float32), 0.0, 1.0)
    adj = adj / jnp.sum(adj, axis=1, keepdims=True)

    weight, bias = init_gcn_params(k_p, in_features, out_features, use_bias=True)

    out = graph_convolution(x, adj, weight, bias)
    out = jax.block_until_ready(out)

    ref = graph_convolution_ref(x, adj, weight, bias)
    assert out.shape == (N, out_features), out.shape
    assert jnp.allclose(out, ref, atol=1e-3, rtol=1e-3), (
        "mismatch vs reference: max abs err = %e"
        % float(jnp.max(jnp.abs(out - ref))))

    print("KERNEL_OK")
</pallas_src>

<mosaic_0001>
module attributes {stable_mosaic.version = 11 : i64} {
  func.func @_matmul_bias_kernel(%arg0: i32, %arg1: i32, %arg2: i32, %arg3: memref<256x128xf32, #tpu.memory_space<vmem>>, %arg4: memref<128x128xf32, #tpu.memory_space<vmem>>, %arg5: memref<1x128xf32, #tpu.memory_space<vmem>>, %arg6: memref<256x128xf32, #tpu.memory_space<vmem>>, %arg7: memref<256x128xf32, #tpu.memory_space<vmem>>) attributes {dimension_semantics = [#tpu.dimension_semantics<parallel>, #tpu.dimension_semantics<parallel>, #tpu.dimension_semantics<arbitrary>], iteration_bounds = array<i64: 2, 1, 1>, scalar_prefetch = 0 : i64, scratch_operands = 1 : i64, tpu.core_type = #tpu.core_type<tc>, window_params = [{transform_indices = @transform_0, window_bounds = array<i64: 256, 128>}, {transform_indices = @transform_1, window_bounds = array<i64: 128, 128>}, {transform_indices = @transform_2, window_bounds = array<i64: 1, 128>}, {transform_indices = @transform_3, window_bounds = array<i64: 256, 128>}]} {
    %c0_i32 = arith.constant 0 : i32
    %0 = arith.cmpi eq, %arg2, %c0_i32 : i32
    %1 = arith.extui %0 : i1 to i32
    %c0_i32_0 = arith.constant 0 : i32
    %2 = arith.cmpi ne, %1, %c0_i32_0 : i32
    scf.if %2 {
      %cst_10 = arith.constant 0.000000e+00 : f32
      %12 = vector.broadcast %cst_10 : f32 to vector<256x128xf32>
      %c0_11 = arith.constant 0 : index
      %c0_12 = arith.constant 0 : index
      %13 = vector.load %arg7[%c0_11, %c0_12] : memref<256x128xf32, #tpu.memory_space<vmem>>, vector<256x128xf32>
      tpu.vector_store %arg7[%c0_11, %c0_12], %12 {strides = array<i32>} : memref<256x128xf32, #tpu.memory_space<vmem>>, vector<256x128xf32>,
    } else {
    }
    %c0 = arith.constant 0 : index
    %c0_1 = arith.constant 0 : index
    %3 = vector.load %arg7[%c0, %c0_1] : memref<256x128xf32, #tpu.memory_space<vmem>>, vector<256x128xf32>
    %c0_2 = arith.constant 0 : index
    %c0_3 = arith.constant 0 : index
    %4 = vector.load %arg3[%c0_2, %c0_3] : memref<256x128xf32, #tpu.memory_space<vmem>>, vector<256x128xf32>
    %c0_4 = arith.constant 0 : index
    %c0_5 = arith.constant 0 : index
    %5 = vector.load %arg4[%c0_4, %c0_5] : memref<128x128xf32, #tpu.memory_space<vmem>>, vector<128x128xf32>
    %cst = arith.constant dense<0.000000e+00> : vector<256x128xf32>
    %6 = tpu.matmul %4, %5, %cst {dimension_numbers = #tpu.dot_dimension_numbers<[1], [0], [0], [1], [0, 0, 1, 1], [], []>} : vector<256x128xf32>, vector<128x128xf32>, vector<256x128xf32> -> vector<256x128xf32>
    %7 = arith.addf %3, %6 : vector<256x128xf32>
    %c0_6 = arith.constant 0 : index
    %c0_7 = arith.constant 0 : index
    %8 = vector.load %arg7[%c0_6, %c0_7] : memref<256x128xf32, #tpu.memory_space<vmem>>, vector<256x128xf32>
    tpu.vector_store %arg7[%c0_6, %c0_7], %7 {strides = array<i32>} : memref<256x128xf32, #tpu.memory_space<vmem>>, vector<256x128xf32>,
    %c0_i32_8 = arith.constant 0 : i32
    %9 = arith.cmpi eq, %arg2, %c0_i32_8 : i32
    %10 = arith.extui %9 : i1 to i32
    %c0_i32_9 = arith.constant 0 : i32
    %11 = arith.cmpi ne, %10, %c0_i32_9 : i32
    scf.if %11 {
      %c0_10 = arith.constant 0 : index
      %c0_11 = arith.constant 0 : index
      %12 = vector.load %arg7[%c0_10, %c0_11] : memref<256x128xf32, #tpu.memory_space<vmem>>, vector<256x128xf32>
      %c0_12 = arith.constant 0 : index
      %c0_13 = arith.constant 0 : index
      %13 = vector.load %arg5[%c0_12, %c0_13] : memref<1x128xf32, #tpu.memory_space<vmem>>, vector<1x128xf32>
      %14 = vector.broadcast %13 : vector<1x128xf32> to vector<256x128xf32>
      %15 = arith.addf %12, %14 : vector<256x128xf32>
      %c0_14 = arith.constant 0 : index
      %c0_15 = arith.constant 0 : index
      %16 = vector.load %arg6[%c0_14, %c0_15] : memref<256x128xf32, #tpu.memory_space<vmem>>, vector<256x128xf32>
      tpu.vector_store %arg6[%c0_14, %c0_15], %15 {strides = array<i32>} : memref<256x128xf32, #tpu.memory_space<vmem>>, vector<256x128xf32>,
    } else {
    }
    return
  }
  func.func @transform_0(%arg0: i32, %arg1: i32, %arg2: i32) -> (i32, i32) {
    %c0_i32 = arith.constant 0 : i32
    return %arg0, %arg2 : i32, i32
  }
  func.func @transform_1(%arg0: i32, %arg1: i32, %arg2: i32) -> (i32, i32) {
    %c0_i32 = arith.constant 0 : i32
    return %arg2, %arg1 : i32, i32
  }
  func.func @transform_2(%arg0: i32, %arg1: i32, %arg2: i32) -> (i32, i32) {
    %c0_i32 = arith.constant 0 : i32
    %c0_i32_0 = arith.constant 0 : i32
    return %c0_i32, %arg1 : i32, i32
  }
  func.func @transform_3(%arg0: i32, %arg1: i32, %arg2: i32) -> (i32, i32) {
    %c0_i32 = arith.constant 0 : i32
    return %arg0, %arg1 : i32, i32
  }
}

</mosaic_0001>

<bundles_post_ra>
// kernel: tpu_custom_call.1
= control target key start
LH: loop header
LB: loop body
LE: loop exit
PB: predicated region body
PF: predicated region fallthrough
CT: control target
= control target key end

     0   :  { %8 = vsyncpa [#allocation4], 0  ;;  %s1618_s0 = inlined_call_operand.hbm [shape: f32[512,128], index: 0, kind: input, shape index: {}]   ;;  %s1619_s1 = inlined_call_operand.hbm [shape: f32[128,128], index: 1, kind: input, shape index: {}]   ;;  %s1620_s2 = inlined_call_operand.vmem [shape: f32[1,128], index: 2, kind: input, shape index: {}]   ;;  %s1621_s3 = inlined_call_operand.hbm [shape: f32[512,128], index: 3, kind: output, shape index: {}]  }
   0x1   :  { %10 = vsyncpa [#allocation4 + $0x1], 0 }
   0x2   :  { %11 = vsyncpa [#allocation7], 0 }
   0x3   :  { %12 = vsyncpa [#allocation5], 0 }
   0x4   :  { %14 = vsyncpa [#allocation5 + $0x1], 0  ;;  %s1321_s12 = smov 0   ;;  %s1323_s13 = smov 0  }
   0x5   :  { %s1325_s14 = smov 0   ;;  %s1327_s15 = smov 0  }
   0x6   :  { %s1329_s16 = smov 0   ;;  %s1331_s17 = smov 0  }
   0x7 LB: > { %s896_s18 = sadd.s32 4294967295, %s1292_s17   ;;  %s897_s19 = sadd.s32 4294967294, %s1292_s17   ;;  %s1292_s17 = sphi %s1331_s17, %s20_s17   ;;  %s1288_s16 = sphi %s1329_s16, %s1643_s16   ;;  %s1284_s15 = sphi %s1327_s15, %s1642_s15   ;;  %s1280_s14 = sphi %s1325_s14, %s1641_s14   ;;  %s1276_s13 = sphi %s1323_s13, %s1640_s13   ;;  %s1272_s12 = sphi %s1321_s12, %s1639_s12  }
   0x8   : > { %p61_p0 = scmp.ne.s32.totalorder %s1276_s13, %s1272_s12  ;;  %p1355_p1 = scmp.eq.s32.totalorder %s896_s18, 0 }
   0x9   : > { %p1359_p2 = scmp.eq.s32.totalorder %s896_s18, 1  ;;  %p147_p3 = scmp.eq.s32.totalorder %s897_s19, 1 }
   0xa   : > { %p1365_p4 = por %p1355_p1, %p61_p0  ;;  %p898_p5 = scmp.ge.s32.totalorder %s1292_s17, 1 }
   0xb   : > { %p1370_p6 = por %p147_p3, %p61_p0  ;;  %p154_p7 = scmp.lt.s32.totalorder %s1292_s17, 3 }
   0xc   : > { %s1627_s22 = scalar_select %p1365_p4, 1, 0 }
   0xd   : > { %s1628_s23 = scalar_select %p1370_p6, 1, 0 }
   0xe   : > { %p1375_p8 = pnand %p898_p5, %p154_p7  ;;  %s1294_s25 = smov [#allocation6]  }
   0xf   : > { %s170_s26 = sshll.u32 %s1294_s25, 4  ;;  %s39_s28 = sadd.s32 1, %s1288_s16  ;;  %s171_s26 = int_to_ptr.vmem [resolvable:$true] %s170_s26 }
  0x10   : > { %p1085_p9 = pneg %p1375_p8  ;;  %s1165_s29 = scalar_lea.vmem %s171_s26, 2048 }
  0x11   : > { %p1166_p13 = scmp.ne.s32.totalorder %s171_s26, %s1165_s29  ;;  %p1173_p5 = scmp.lt.s32.totalorder %s171_s26, %s171_s26 }
  0x12   : > { %p1384_p11 = pnand %p1085_p9, %p1355_p1  ;;  %p1174_p7 = scmp.lt.s32.totalorder %s1165_s29, %s1165_s29 }
  0x14   : > { %p1156_p12 = pneg %p1384_p11  ;;  %p1175_p6 = por %p1174_p7, %p1173_p5 }
  0x16   : > { %p1168_p0 = pnand %p1166_p13, %p1156_p12 }
  0x18   : > { %p1169_p3 = pneg %p1168_p0 }
  0x1a   : > { %p1176_p4 = pnand %p1175_p6, %p1169_p3 }
  0x1c   : > { %1179 = shalt.err (!%p1176_p4)
}
  0x1d   : > { %s1623_s30 = smov 128   ;;  %s1624_s4 = smov 8  }
  0x1e   : > { %1088 = dma.hbm_to_vmem [thread:$0]  (!%p1384_p11), %s1619_s1, 2048, %s171_s26, [#allocation7], %s1623_s30, %s1623_s30, %s1624_s4  }
  0x1f   : > { %p41_p4 = scmp.ge.s32.totalorder %s39_s28, 2  ;;  %s48_s7 = sadd.s32 1, %s1280_s14 }
  0x20   : > { %p55_p6 = scmp.ne.s32.totalorder %s1280_s14, %s1276_s13  ;;  %p56_p9 = scmp.eq.s32.totalorder %s1292_s17, 0 }
  0x21   : > { %s1645_s28 = smov (%p41_p4, %s39_s28), 0  ;;  %p1098_p0 = scmp.lt.s32.totalorder %s1292_s17, 2 }
  0x22   : > { %p1405_p12 = por %p56_p9, %p55_p6  ;;  %p1411_p13 = por %p1359_p2, %p55_p6 }
  0x23   : > { %s43_s10 = ssub.s32 %s1288_s16, %s1645_s28  ;;  %s190_s11 = sand.u32 1, %s1280_s14  }
  0x24   : > { %p46_p11 = scmp.eq.s32.totalorder %s43_s10, 0  ;;  %s902_s18 = sshll.u32 %s190_s11, 8 }
  0x25   : > { %s915_s25 = sshll.u32 %s1288_s16, 12  ;;  %s194_s5 = scalar_lea.vmem [#allocation3], %s902_s18 }
  0x26   : > { %s1420_s19 = scalar_select %p46_p11, %s1280_s14, %s48_s7  }
  0x27   : > { %s201_s29 = scalar_lea.hbm %s1618_s0, %s915_s25  ;;  %s202_s6 = sshll.u32 %s194_s5, 4  ;;  %s203_s6 = int_to_ptr.vmem [resolvable:$true] %s202_s6 }
  0x28   : > { %p1428_p2 = pnand %p1098_p0, %p1405_p12  ;;  %s191_s30 = scalar_lea.sflag [#allocation4], %s190_s11 }
  0x29   : > { %s1193_s10 = scalar_lea.vmem %s203_s6, 4096  ;;  %s1297_s7 = smov [#allocation3]  }
  0x2a   : > { %p1182_p3 = pneg %p1428_p2  ;;  %p1194_p5 = scmp.ne.s32.totalorder %s203_s6, %s1193_s10 }
  0x2b   : > { %s1198_s4 = sshll.u32 %s1297_s7, 4  ;;  %s1199_s4 = int_to_ptr.vmem [resolvable:$false] %s1198_s4 }
  0x2c   : > { %p1196_p7 = pnand %p1194_p5, %p1182_p3  ;;  %s1200_s25 = scalar_lea.vmem %s1199_s4, 8192 }
  0x2d   : > { %p1201_p6 = scmp.lt.s32.totalorder %s203_s6, %s1199_s4  ;;  %p1202_p9 = scmp.lt.s32.totalorder %s1200_s25, %s1193_s10 }
  0x2e   : > { %p1197_p4 = pneg %p1196_p7 }
  0x2f   : > { %p1203_p11 = por %p1202_p9, %p1201_p6 }
  0x31   : > { %p1204_p10 = pnand %p1203_p11, %p1197_p4 }
  0x33   : > { %1207 = shalt.err (!%p1204_p10)
}
  0x34   : > { %s1634_s8 = smov 8   ;;  %s1635_s18 = smov 128  }
  0x35   : > { %1092 = dma.hbm_to_vmem [thread:$0]  (!%p1428_p2), %s201_s29, 4096, %s203_s6, %s191_s30, %s1635_s18, %s1635_s18, %s1634_s8  }
  0x36   : > { %214 = sbr.rel (%p1375_p8) target bundleno = 335 (0x14f), region = 32  ;;  %s1442_s11 = sand.u32 (!%p1375_p8), 1, %s1276_s13  }
  0x37   : > { %s906_s4 = sshll.u32 (!%p1375_p8), %s1442_s11, 8  ;;  %s217_s26 = scalar_lea.sflag (!%p1375_p8), [#allocation4], %s1442_s11 }
  0x38   : > { %s1448_s27 = scalar_lea.vmem (!%p1375_p8), [#allocation3], %s906_s4  ;;  %p1636_p10 = scmp.ne.s32.totalorder (!%p1375_p8), %s1627_s22, 0 }
  0x3b   : > { %1259 = dma.done.wait (%p1636_p10), %s217_s26, 4096  }
  0x3c   : > { %1261 = vsyncadd (%p1636_p10), %s217_s26, 4294963200 }
  0x3d   : > { %1263 = dma.done.wait (%p1355_p1), [#allocation7], 2048  }
  0x3e   : > { %1265 = vsyncadd (%p1355_p1), [#allocation7], 4294965248  ;;  %v371_v0 = vld [vmem:[#allocation6 + $0x78] sm:$0xff]  ;;  %v370_v1 = vld [vmem:[#allocation6 + $0x70] sm:$0xff]  ;;  %s1499_s24 = scalar_lea.vmem [#allocation8], %s906_s4  ;;  %s916_s30 = sshll.u32 %s1284_s15, 12 }
  0x3f   : > { %965 = vmatprep.subr.mxu0 %v371_v0  ;;  %1045 = vmatprep.subr.mxu1 %v371_v0  ;;  %v369_v2 = vld [vmem:[#allocation6 + $0x68] sm:$0xff]  ;;  %v368_v3 = vld [vmem:[#allocation6 + $0x60] sm:$0xff]  ;;  %v367_v4 = vld [vmem:[#allocation6 + $0x58] sm:$0xff]  ;;  %s782_s29 = sshll.u32 %s1499_s24, 4  ;;  %s1562_s21 = scalar_lea.hbm %s1621_s3, %s916_s30  ;;  %s1564_s29 = int_to_ptr.vmem [resolvable:$true] %s782_s29 }
  0x40   : > { %966 = vmatpush3.msra.mxu0 %v371_v0  ;;  %1061 = vmatpush3.msra.mxu1 %v371_v0  ;;  %v366_v5 = vld [vmem:[#allocation6 + $0x50] sm:$0xff]  ;;  %v365_v6 = vld [vmem:[#allocation6 + $0x48] sm:$0xff]  ;;  %v364_v7 = vld [vmem:[#allocation6 + $0x40] sm:$0xff]  ;;  %s768_s15 = scalar_lea.sflag [#allocation5], %s1442_s11  ;;  %s1208_s10 = scalar_lea.vmem %s1564_s29, 4096 }
  0x41   : > { %967 = vmatprep.subr.mxu0 %v370_v1  ;;  %1046 = vmatprep.subr.mxu1 %v370_v1  ;;  %v363_v8 = vld [vmem:[#allocation6 + $0x38] sm:$0xff]  ;;  %v362_v9 = vld [vmem:[#allocation6 + $0x30] sm:$0xff]  ;;  %v361_v10 = vld [vmem:[#allocation6 + $0x28] sm:$0xff]  ;;  %p1209_p1 = scmp.ne.s32.totalorder %s1564_s29, %s1208_s10  ;;  %s1298_s7 = smov [#allocation8]  }
  0x42   : > { %968 = vmatpush3.msra.mxu0 %v370_v1  ;;  %1062 = vmatpush3.msra.mxu1 %v370_v1  ;;  %v360_v11 = vld [vmem:[#allocation6 + $0x20] sm:$0xff]  ;;  %v359_v12 = vld [vmem:[#allocation6 + $0x18] sm:$0xff]  ;;  %v358_v13 = vld [vmem:[#allocation6 + $0x10] sm:$0xff]  ;;  %s1212_s25 = sshll.u32 %s1298_s7, 4  ;;  %s1213_s25 = int_to_ptr.vmem [resolvable:$false] %s1212_s25 }
  0x43   : > { %969 = vmatprep.subr.mxu0 %v369_v2  ;;  %1047 = vmatprep.subr.mxu1 %v369_v2  ;;  %v357_v14 = vld [vmem:[#allocation6 + $0x8] sm:$0xff]  ;;  %v356_v15 = vld [vmem:[#allocation6] sm:$0xff]  ;;  %v326_v20 = vld [vmem:[%s1448_s27 + $0x10] sm:$0xff]  ;;  %p1210_p8 = pnand %p1209_p1, %p1411_p13  ;;  %s1214_s8 = scalar_lea.vmem %s1213_s25, 8192 }
  0x44   : > { %970 = vmatpush3.msra.mxu0 %v369_v2  ;;  %1063 = vmatpush3.msra.mxu1 %v369_v2  ;;  %v324_v16 = vld [vmem:[%s1448_s27] sm:$0xff]  ;;  %v325_v18 = vld [vmem:[%s1448_s27 + $0x8] sm:$0xff]  ;;  %v342_v21 = vld [vmem:[%s1448_s27 + $0x90] sm:$0xff]  ;;  %p1215_p0 = scmp.lt.s32.totalorder %s1564_s29, %s1213_s25  ;;  %p1216_p2 = scmp.lt.s32.totalorder %s1214_s8, %s1208_s10 }
  0x45   : > { %971 = vmatprep.subr.mxu0 %v368_v3  ;;  %1048 = vmatprep.subr.mxu1 %v368_v3  ;;  %v340_v17 = vld [vmem:[%s1448_s27 + $0x80] sm:$0xff]  ;;  %v341_v19 = vld [vmem:[%s1448_s27 + $0x88] sm:$0xff]  ;;  %v327_v22 = vld [vmem:[%s1448_s27 + $0x18] sm:$0xff]  ;;  %p1211_p12 = pneg %p1210_p8 }
  0x46   : > { %972 = vmatpush3.msra.mxu0 %v368_v3  ;;  %1064 = vmatpush3.msra.mxu1 %v368_v3  ;;  %v343_v23 = vld [vmem:[%s1448_s27 + $0x98] sm:$0xff]  ;;  %v328_v24 = vld [vmem:[%s1448_s27 + $0x20] sm:$0xff]  ;;  %v329_v26 = vld [vmem:[%s1448_s27 + $0x28] sm:$0xff]  ;;  %p1217_p3 = por %p1216_p2, %p1215_p0 }
  0x47   : > { %973 = vmatprep.subr.mxu0 %v367_v4  ;;  %1049 = vmatprep.subr.mxu1 %v367_v4  ;;  %v344_v25 = vld [vmem:[%s1448_s27 + $0xa0] sm:$0xff]  ;;  %v345_v27 = vld [vmem:[%s1448_s27 + $0xa8] sm:$0xff]  ;;  %v330_v28 = vld [vmem:[%s1448_s27 + $0x30] sm:$0xff] }
  0x48   : > { %974 = vmatpush3.msra.mxu0 %v367_v4  ;;  %1065 = vmatpush3.msra.mxu1 %v367_v4  ;;  %v346_v29 = vld [vmem:[%s1448_s27 + $0xb0] sm:$0xff]  ;;  %v331_v30 = vld [vmem:[%s1448_s27 + $0x38] sm:$0xff]  ;;  %v332_v32 = vld [vmem:[%s1448_s27 + $0x40] sm:$0xff]  ;;  %p1218_p5 = pnand %p1217_p3, %p1211_p12 }
  0x49   : > { %975 = vmatprep.subr.mxu0 %v366_v5  ;;  %1050 = vmatprep.subr.mxu1 %v366_v5  ;;  %v347_v31 = vld [vmem:[%s1448_s27 + $0xb8] sm:$0xff]  ;;  %v348_v33 = vld [vmem:[%s1448_s27 + $0xc0] sm:$0xff]  ;;  %v333_v34 = vld [vmem:[%s1448_s27 + $0x48] sm:$0xff] }
  0x4a   : > { %976 = vmatpush3.msra.mxu0 %v366_v5  ;;  %1066 = vmatpush3.msra.mxu1 %v366_v5  ;;  %v349_v35 = vld [vmem:[%s1448_s27 + $0xc8] sm:$0xff]  ;;  %v334_v36 = vld [vmem:[%s1448_s27 + $0x50] sm:$0xff]  ;;  %v335_v38 = vld [vmem:[%s1448_s27 + $0x58] sm:$0xff] }
  0x4b   : > { %977 = vmatprep.subr.mxu0 %v365_v6  ;;  %1051 = vmatprep.subr.mxu1 %v365_v6  ;;  %v350_v37 = vld [vmem:[%s1448_s27 + $0xd0] sm:$0xff]  ;;  %v351_v39 = vld [vmem:[%s1448_s27 + $0xd8] sm:$0xff]  ;;  %v336_v40 = vld [vmem:[%s1448_s27 + $0x60] sm:$0xff] }
  0x4c   : > { %978 = vmatpush3.msra.mxu0 %v365_v6  ;;  %1067 = vmatpush3.msra.mxu1 %v365_v6  ;;  %v352_v41 = vld [vmem:[%s1448_s27 + $0xe0] sm:$0xff]  ;;  %v337_v42 = vld [vmem:[%s1448_s27 + $0x68] sm:$0xff]  ;;  %v338_v44 = vld [vmem:[%s1448_s27 + $0x70] sm:$0xff] }
  0x4d   : > { %979 = vmatprep.subr.mxu0 %v364_v7  ;;  %1052 = vmatprep.subr.mxu1 %v364_v7  ;;  %v353_v43 = vld [vmem:[%s1448_s27 + $0xe8] sm:$0xff]  ;;  %v354_v45 = vld [vmem:[%s1448_s27 + $0xf0] sm:$0xff]  ;;  %v339_v46 = vld [vmem:[%s1448_s27 + $0x78] sm:$0xff] }
  0x4e   : > { %980 = vmatpush3.msra.mxu0 %v364_v7  ;;  %1068 = vmatpush3.msra.mxu1 %v364_v7  ;;  %v355_v47 = vld [vmem:[%s1448_s27 + $0xf8] sm:$0xff]  ;;  %v1493_v48 = vld [vmem:[%s1620_s2] ss:$0 sm:$0xff] }
  0x4f   : > { %981 = vmatprep.subr.mxu0 %v363_v8  ;;  %1053 = vmatprep.subr.mxu1 %v363_v8 }
  0x50   : > { %982 = vmatpush3.msra.mxu0 %v363_v8  ;;  %1069 = vmatpush3.msra.mxu1 %v363_v8 }
  0x51   : > { %983 = vmatprep.subr.mxu0 %v362_v9  ;;  %1054 = vmatprep.subr.mxu1 %v362_v9 }
  0x52   : > { %984 = vmatpush3.msra.mxu0 %v362_v9  ;;  %1070 = vmatpush3.msra.mxu1 %v362_v9 }
  0x53   : > { %985 = vmatprep.subr.mxu0 %v361_v10  ;;  %1055 = vmatprep.subr.mxu1 %v361_v10 }
  0x54   : > { %986 = vmatpush3.msra.mxu0 %v361_v10  ;;  %1071 = vmatpush3.msra.mxu1 %v361_v10 }
  0x55   : > { %987 = vmatprep.subr.mxu0 %v360_v11  ;;  %1056 = vmatprep.subr.mxu1 %v360_v11 }
  0x56   : > { %988 = vmatpush3.msra.mxu0 %v360_v11  ;;  %1072 = vmatpush3.msra.mxu1 %v360_v11 }
  0x57   : > { %989 = vmatprep.subr.mxu0 %v359_v12  ;;  %1057 = vmatprep.subr.mxu1 %v359_v12 }
  0x58   : > { %990 = vmatpush3.msra.mxu0 %v359_v12  ;;  %1073 = vmatpush3.msra.mxu1 %v359_v12 }
  0x59   : > { %991 = vmatprep.subr.mxu0 %v358_v13  ;;  %1058 = vmatprep.subr.mxu1 %v358_v13 }
  0x5a   : > { %992 = vmatpush3.msra.mxu0 %v358_v13  ;;  %1074 = vmatpush3.msra.mxu1 %v358_v13 }
  0x5b   : > { %993 = vmatprep.subr.mxu0 %v357_v14  ;;  %1059 = vmatprep.subr.mxu1 %v357_v14 }
  0x5c   : > { %994 = vmatpush3.msra.mxu0 %v357_v14  ;;  %1075 = vmatpush3.msra.mxu1 %v357_v14 }
  0x5d   : > { %995 = vmatprep.subr.mxu0 %v356_v15  ;;  %1060 = vmatprep.subr.mxu1 %v356_v15 }
  0x5e   : > { %996 = vmatpush3.msra.mxu0 %v356_v15  ;;  %1076 = vmatpush3.msra.mxu1 %v356_v15 }
  0x5f   : > { %997 = vmatprep.mubr.f32.mxu0 %v324_v16  ;;  %1021 = vmatprep.mubr.f32.mxu1 %v340_v17 }
  0x60   : > { %998 = vmatmul.mubr.f32.vlgmr.msra.gmra.mxu0 %v325_v18  ;;  %1022 = vmatmul.mubr.f32.vlgmr.msra.gmra.mxu1 %v341_v19 }
  0x61   : > { %1000 = vmatprep.mubr.f32.mxu0 %v326_v20  ;;  %1024 = vmatprep.mubr.f32.mxu1 %v342_v21 }
  0x64   : > { %1001 = vmatmul.mubr.f32.gmra.mxu0 %v327_v22  ;;  %1025 = vmatmul.mubr.f32.gmra.mxu1 %v343_v23 }
  0x65   : > { %1003 = vmatprep.mubr.f32.mxu0 %v328_v24  ;;  %1027 = vmatprep.mubr.f32.mxu1 %v344_v25 }
  0x68   : > { %1004 = vmatmul.mubr.f32.gmra.mxu0 %v329_v26  ;;  %1028 = vmatmul.mubr.f32.gmra.mxu1 %v345_v27 }
  0x69   : > { %1006 = vmatprep.mubr.f32.mxu0 %v330_v28  ;;  %1030 = vmatprep.mubr.f32.mxu1 %v346_v29 }
  0x6c   : > { %1007 = vmatmul.mubr.f32.gmra.mxu0 %v331_v30  ;;  %1031 = vmatmul.mubr.f32.gmra.mxu1 %v347_v31 }
  0x6d   : > { %1009 = vmatprep.mubr.f32.mxu0 %v332_v32  ;;  %1033 = vmatprep.mubr.f32.mxu1 %v348_v33 }
  0x70   : > { %1010 = vmatmul.mubr.f32.gmra.mxu0 %v333_v34  ;;  %1034 = vmatmul.mubr.f32.gmra.mxu1 %v349_v35 }
  0x71   : > { %1012 = vmatprep.mubr.f32.mxu0 %v334_v36  ;;  %1036 = vmatprep.mubr.f32.mxu1 %v350_v37 }
  0x74   : > { %1013 = vmatmul.mubr.f32.gmra.mxu0 %v335_v38  ;;  %1037 = vmatmul.mubr.f32.gmra.mxu1 %v351_v39 }
  0x75   : > { %1015 = vmatprep.mubr.f32.mxu0 %v336_v40  ;;  %1039 = vmatprep.mubr.f32.mxu1 %v352_v41 }
  0x78   : > { %1016 = vmatmul.mubr.f32.gmra.mxu0 %v337_v42  ;;  %1040 = vmatmul.mubr.f32.gmra.mxu1 %v353_v43 }
  0x79   : > { %1018 = vmatprep.mubr.f32.mxu0 %v338_v44  ;;  %1042 = vmatprep.mubr.f32.mxu1 %v354_v45 }
  0x7c   : > { %1019 = vmatmul.mubr.f32.gmra.mxu0 %v339_v46  ;;  %1043 = vmatmul.mubr.f32.gmra.mxu1 %v355_v47 }
 0x120   : > { %v999_v49 = vpop.f32.mrf.mxu0  ;;  %v1023_v50 = vpop.f32.mrf.mxu1 }
 0x121   : > { %v704_v51 = vadd.f32 %v999_v49, %v1493_v48  ;;  %v720_v52 = vadd.f32 %v1023_v50, %v1493_v48 }
 0x122   : > { %v438_v53 = vpop.f32.mrf.mxu0  ;;  %v518_v54 = vpop.f32.mrf.mxu1 }
 0x123   : > { %736 = vst [vmem:[%s1499_s24 + $0x8] sm:$0xff] %v704_v51  ;;  %752 = vst [vmem:[%s1499_s24 + $0x88] sm:$0xff] %v720_v52  ;;  %v703_v55 = vadd.f32 %v1493_v48, %v438_v53  ;;  %v719_v56 = vadd.f32 %v1493_v48, %v518_v54 }
 0x124   : > { %v1002_v57 = vpop.f32.mrf.mxu0  ;;  %v1026_v58 = vpop.f32.mrf.mxu1 }
 0x125   : > { %735 = vst [vmem:[%s1499_s24] sm:$0xff] %v703_v55  ;;  %751 = vst [vmem:[%s1499_s24 + $0x80] sm:$0xff] %v719_v56  ;;  %v706_v59 = vadd.f32 %v1002_v57, %v1493_v48  ;;  %v722_v60 = vadd.f32 %v1026_v58, %v1493_v48 }
 0x126   : > { %v448_v61 = vpop.f32.mrf.mxu0  ;;  %v528_v62 = vpop.f32.mrf.mxu1 }
 0x127   : > { %738 = vst [vmem:[%s1499_s24 + $0x18] sm:$0xff] %v706_v59  ;;  %754 = vst [vmem:[%s1499_s24 + $0x98] sm:$0xff] %v722_v60  ;;  %v705_v63 = vadd.f32 %v1493_v48, %v448_v61  ;;  %v721_v0 = vadd.f32 %v1493_v48, %v528_v62 }
 0x128   : > { %v1005_v1 = vpop.f32.mrf.mxu0  ;;  %v1029_v2 = vpop.f32.mrf.mxu1 }
 0x129   : > { %737 = vst [vmem:[%s1499_s24 + $0x10] sm:$0xff] %v705_v63  ;;  %753 = vst [vmem:[%s1499_s24 + $0x90] sm:$0xff] %v721_v0  ;;  %v708_v3 = vadd.f32 %v1005_v1, %v1493_v48  ;;  %v724_v4 = vadd.f32 %v1029_v2, %v1493_v48 }
 0x12a   : > { %v458_v5 = vpop.f32.mrf.mxu0  ;;  %v538_v6 = vpop.f32.mrf.mxu1 }
 0x12b   : > { %740 = vst [vmem:[%s1499_s24 + $0x28] sm:$0xff] %v708_v3  ;;  %756 = vst [vmem:[%s1499_s24 + $0xa8] sm:$0xff] %v724_v4  ;;  %v707_v7 = vadd.f32 %v1493_v48, %v458_v5  ;;  %v723_v8 = vadd.f32 %v1493_v48, %v538_v6 }
 0x12c   : > { %v1008_v9 = vpop.f32.mrf.mxu0  ;;  %v1032_v10 = vpop.f32.mrf.mxu1 }
 0x12d   : > { %739 = vst [vmem:[%s1499_s24 + $0x20] sm:$0xff] %v707_v7  ;;  %755 = vst [vmem:[%s1499_s24 + $0xa0] sm:$0xff] %v723_v8  ;;  %v710_v11 = vadd.f32 %v1008_v9, %v1493_v48  ;;  %v726_v12 = vadd.f32 %v1032_v10, %v1493_v48 }
 0x12e   : > { %v468_v13 = vpop.f32.mrf.mxu0  ;;  %v548_v14 = vpop.f32.mrf.mxu1 }
 0x12f   : > { %742 = vst [vmem:[%s1499_s24 + $0x38] sm:$0xff] %v710_v11  ;;  %758 = vst [vmem:[%s1499_s24 + $0xb8] sm:$0xff] %v726_v12  ;;  %v709_v15 = vadd.f32 %v1493_v48, %v468_v13  ;;  %v725_v16 = vadd.f32 %v1493_v48, %v548_v14 }
 0x130   : > { %v1011_v17 = vpop.f32.mrf.mxu0  ;;  %v1035_v18 = vpop.f32.mrf.mxu1 }
 0x131   : > { %741 = vst [vmem:[%s1499_s24 + $0x30] sm:$0xff] %v709_v15  ;;  %757 = vst [vmem:[%s1499_s24 + $0xb0] sm:$0xff] %v725_v16  ;;  %v712_v19 = vadd.f32 %v1011_v17, %v1493_v48  ;;  %v728_v20 = vadd.f32 %v1035_v18, %v1493_v48 }
 0x132   : > { %v478_v21 = vpop.f32.mrf.mxu0  ;;  %v558_v22 = vpop.f32.mrf.mxu1 }
 0x133   : > { %744 = vst [vmem:[%s1499_s24 + $0x48] sm:$0xff] %v712_v19  ;;  %760 = vst [vmem:[%s1499_s24 + $0xc8] sm:$0xff] %v728_v20  ;;  %v711_v23 = vadd.f32 %v1493_v48, %v478_v21  ;;  %v727_v24 = vadd.f32 %v1493_v48, %v558_v22 }
 0x134   : > { %v1014_v25 = vpop.f32.mrf.mxu0  ;;  %v1038_v26 = vpop.f32.mrf.mxu1 }
 0x135   : > { %743 = vst [vmem:[%s1499_s24 + $0x40] sm:$0xff] %v711_v23  ;;  %759 = vst [vmem:[%s1499_s24 + $0xc0] sm:$0xff] %v727_v24  ;;  %v714_v27 = vadd.f32 %v1014_v25, %v1493_v48  ;;  %v730_v28 = vadd.f32 %v1038_v26, %v1493_v48 }
 0x136   : > { %v488_v29 = vpop.f32.mrf.mxu0  ;;  %v568_v30 = vpop.f32.mrf.mxu1 }
 0x137   : > { %746 = vst [vmem:[%s1499_s24 + $0x58] sm:$0xff] %v714_v27  ;;  %762 = vst [vmem:[%s1499_s24 + $0xd8] sm:$0xff] %v730_v28  ;;  %v713_v31 = vadd.f32 %v1493_v48, %v488_v29  ;;  %v729_v32 = vadd.f32 %v1493_v48, %v568_v30 }
 0x138   : > { %v1017_v33 = vpop.f32.mrf.mxu0  ;;  %v1041_v34 = vpop.f32.mrf.mxu1 }
 0x139   : > { %745 = vst [vmem:[%s1499_s24 + $0x50] sm:$0xff] %v713_v31  ;;  %761 = vst [vmem:[%s1499_s24 + $0xd0] sm:$0xff] %v729_v32  ;;  %v716_v35 = vadd.f32 %v1017_v33, %v1493_v48  ;;  %v732_v36 = vadd.f32 %v1041_v34, %v1493_v48 }
 0x13a   : > { %v498_v37 = vpop.f32.mrf.mxu0  ;;  %v578_v38 = vpop.f32.mrf.mxu1 }
 0x13b   : > { %748 = vst [vmem:[%s1499_s24 + $0x68] sm:$0xff] %v716_v35  ;;  %764 = vst [vmem:[%s1499_s24 + $0xe8] sm:$0xff] %v732_v36  ;;  %v715_v39 = vadd.f32 %v1493_v48, %v498_v37  ;;  %v731_v40 = vadd.f32 %v1493_v48, %v578_v38 }
 0x13c   : > { %v1020_v41 = vpop.f32.mrf.mxu0  ;;  %v1044_v42 = vpop.f32.mrf.mxu1 }
 0x13d   : > { %747 = vst [vmem:[%s1499_s24 + $0x60] sm:$0xff] %v715_v39  ;;  %763 = vst [vmem:[%s1499_s24 + $0xe0] sm:$0xff] %v731_v40  ;;  %v718_v43 = vadd.f32 %v1020_v41, %v1493_v48  ;;  %v734_v44 = vadd.f32 %v1044_v42, %v1493_v48 }
 0x13e   : > { %v508_v45 = vpop.f32.mrf.mxu0  ;;  %v588_v46 = vpop.f32.mrf.mxu1 }
 0x13f   : > { %750 = vst [vmem:[%s1499_s24 + $0x78] sm:$0xff] %v718_v43  ;;  %766 = vst [vmem:[%s1499_s24 + $0xf8] sm:$0xff] %v734_v44  ;;  %v717_v47 = vadd.f32 %v1493_v48, %v508_v45  ;;  %v733_v49 = vadd.f32 %v1493_v48, %v588_v46 }
 0x141   : > { %749 = vst [vmem:[%s1499_s24 + $0x70] sm:$0xff] %v717_v47  ;;  %765 = vst [vmem:[%s1499_s24 + $0xf0] sm:$0xff] %v733_v49 }
 0x142   : > { %1221 = shalt.err (!%p1218_p5)
}
 0x143   : > { %s1222_s18 = scalar_lea.hbm %s1562_s21, 4096  ;;  %s1226_s27 = scalar_lea.hbm %s1621_s3, 8192 }
 0x144   : > { %p1223_p7 = scmp.ne.s32.totalorder %s1562_s21, %s1222_s18  ;;  %p1227_p9 = scmp.lt.s32.totalorder %s1562_s21, %s1621_s3 }
 0x145   : > { %p1228_p11 = scmp.lt.s32.totalorder %s1226_s27, %s1222_s18 }
 0x146   : > { %p1224_p4 = pnand %p1223_p7, %p1411_p13 }
 0x147   : > { %p1229_p10 = por %p1228_p11, %p1227_p9 }
 0x148   : > { %p1225_p6 = pneg %p1224_p4 }
 0x14a   : > { %p1230_p1 = pnand %p1229_p10, %p1225_p6 }
 0x14c   : > { %1233 = shalt.err (!%p1230_p1)
}
 0x14d   : > { %s1299_s24 = smov 128   ;;  %s1300_s30 = smov 8  }
 0x14e   : > { %1083 = dma.vmem_to_hbm [thread:$0]  (%p1411_p13), %s1564_s29, 4096, %s1562_s21, %s768_s15, %s1299_s24, %s1299_s24, %s1300_s30  }
 0x14f PF: > { %s797_s5 = sand.u32 1, %s1272_s12   ;;  %p1637_p8 = scmp.ne.s32.totalorder %s1628_s23, 0 }
 0x150   : > { %p1638_p12 = scmp.ge.s32.totalorder %s1292_s17, 2  ;;  %s798_s6 = scalar_lea.sflag [#allocation5], %s797_s5 }
 0x152   : > { %p1094_p0 = pnand %p1638_p12, %p1637_p8 }
 0x154   : > { %p1095_p2 = pneg %p1094_p0 }
 0x156   : > { %1267 = dma.done.wait (%p1095_p2), %s798_s6, 4096  }
 0x157   : > { %1269 = vsyncadd (%p1095_p2), %s798_s6, 4294963200  ;;  %s20_s17 = sadd.s32 1, %s1292_s17   ;;  %s1639_s12 = smov %s1276_s13 }
 0x158   : > { %p17_p3 = scmp.ge.s32.totalorder %s20_s17, 4   ;;  %s1640_s13 = smov %s1280_s14 }
 0x159   : > { %s1641_s14 = smov %s1420_s19  ;;  %s1642_s15 = smov %s1288_s16 }
 0x15a   : > { %s1643_s16 = smov %s1645_s28  ;;  %19 = sbr.rel (!%p17_p3) target bundleno = 7 (0x7), region = 93 }
 0x15f   :  { %803 = vsyncpa [#allocation4], 1 }
 0x160   :  { %805 = vsyncpa [#allocation4 + $0x1], 1 }
 0x161   :  { %806 = vsyncpa [#allocation7], 1 }
 0x162   :  { %807 = vsyncpa [#allocation5], 1 }
 0x163   :  { %809 = vsyncpa [#allocation5 + $0x1], 1 }

</bundles_post_ra>
